<compile_context>
chip_gen: v5e
topology: v5e:2x2
jax: 0.10.0
libtpu: 0.0.40
codegen_flags: <defaults>
</compile_context>

<pallas_src>
import functools

import jax
import jax.numpy as jnp
from jax.experimental import pallas as pl
from jax.experimental.pallas import tpu as pltpu


_SENTINEL = 2 ** 30   # "no class found" marker for the running argmax


def _amsm_kernel(xn_ref, labels_ref, wn_ref, loss_ref, correct_ref,
                 m_i, l_i, lbl_logit, best_val, best_idx,
                 *, scale, margin, subcenters, n_classes):
    j = pl.program_id(1)                       # class-block index (reduction axis)
    cb = wn_ref.shape[1]                       # classes per block

    @pl.when(j == 0)
    def _init():
        m_i[...] = jnp.full_like(m_i, -jnp.inf)
        l_i[...] = jnp.zeros_like(l_i)
        lbl_logit[...] = jnp.zeros_like(lbl_logit)
        best_val[...] = jnp.full_like(best_val, -jnp.inf)
        best_idx[...] = jnp.zeros_like(best_idx)

    xb = xn_ref[...]                           # (rb, E) bf16, rows pre-normalized

    # --- sub-center max: S bf16 MXU matmuls + VPU maximum -------------------
    # Every lane of the (rb, cb) result is a real class column: no dead lanes,
    # no XLU rolls, no lane maps.
    cmax = jax.lax.dot_general(xb, wn_ref[0], (((1,), (1,)), ((), ())),
                               preferred_element_type=jnp.float32)
    for s_i in range(1, subcenters):
        cmax = jnp.maximum(
            cmax,
            jax.lax.dot_general(xb, wn_ref[s_i], (((1,), (1,)), ((), ())),
                                preferred_element_type=jnp.float32))

    # class ids of this block's lanes, built in-kernel (no streamed maps)
    cls_id = j * cb + jax.lax.broadcasted_iota(jnp.int32, (1, cb), 1)    # (1, cb)
    valid = cls_id < n_classes                 # masks the zero-padded classes
    labels = labels_ref[...]                   # (rb, 1) int32
    is_label = jnp.logical_and(valid, cls_id == labels)                  # (rb, cb)

    cmax_m = jnp.where(valid, cmax, -jnp.inf)

    # --- running top-1 of the pre-margin cosine (accuracy bookkeeping) ------
    blk_max = jnp.max(cmax_m, axis=-1, keepdims=True)                    # (rb, 1)
    blk_arg = jnp.min(jnp.where(cmax_m == blk_max, cls_id, _SENTINEL),
                      axis=-1, keepdims=True)                            # (rb, 1)
    take = blk_max > best_val[...]
    best_idx[...] = jnp.where(take, blk_arg, best_idx[...])
    best_val[...] = jnp.where(take, blk_max, best_val[...])

    # --- additive angular margin on the true class, then scale ---------------
    logits = scale * (cmax - jnp.where(is_label, margin, 0.0))
    logits = jnp.where(valid, logits, -jnp.inf)

    # logit of the true class (appears in exactly one class block)
    lbl_logit[...] += jnp.sum(jnp.where(is_label, logits, 0.0),
                              axis=-1, keepdims=True)

    # --- online logsumexp across class blocks --------------------------------
    # scale*blk_max upper-bounds every logit of the block (margin >= 0 only
    # subtracts), so the running max reuses the reduction done for the argmax.
    m_new = jnp.maximum(m_i[...], scale * blk_max)
    l_i[...] = (l_i[...] * jnp.exp(m_i[...] - m_new)
                + jnp.sum(jnp.exp(logits - m_new), axis=-1, keepdims=True))
    m_i[...] = m_new

    @pl.when(j == pl.num_programs(1) - 1)
    def _finalize():
        lse = m_i[...] + jnp.log(l_i[...])                               # (rb, 1)
        loss_ref[...] = lse - lbl_logit[...]                             # per-row CE
        correct_ref[...] = (best_idx[...] == labels).astype(jnp.int32)


def angular_margin_softmax_loss(x, labels, W, *, s=35.0, m=0.2,
                                class_block=512, row_block=None):
    """Returns (loss, acc1) matching AngularMarginSoftMaxLoss_SubCenters.forward."""
    N, E = x.shape
    C, S, E_w = W.shape
    assert E_w == E
    assert m >= 0.0, "margin must be non-negative for the LSE bound used here"

    # Large default row block so W is streamed from HBM ~once (R small).
    if row_block is None:
        row_block = 512 if (N > 512 and N % 512 == 0) else N
    assert N % row_block == 0
    assert row_block == N or row_block % 8 == 0
    R = N // row_block

    # class tiling: multiples of 128 lanes, ragged tail handled by zero padding
    # + in-kernel masking.
    cb = max(128, int(pl.cdiv(class_block, 128)) * 128)
    cb = min(cb, int(pl.cdiv(C, 128)) * 128)
    J = int(pl.cdiv(C, cb))
    C_pad = J * cb

    eps = 1e-12

    # --- one-time wrapper prep (normalized, bf16, sub-center-major W) --------
    w32 = W.astype(jnp.float32)
    wn = w32 * jax.lax.rsqrt(
        jnp.maximum(jnp.sum(w32 * w32, axis=-1, keepdims=True), eps * eps))
    wn = jnp.transpose(wn, (1, 0, 2))                       # (S, C, E)
    if C_pad != C:
        wn = jnp.pad(wn, ((0, 0), (0, C_pad - C), (0, 0)))  # padded classes = 0
    wn_bf16 = wn.astype(jnp.bfloat16)

    x32 = x.astype(jnp.float32)
    xn = x32 * jax.lax.rsqrt(
        jnp.maximum(jnp.sum(x32 * x32, axis=-1, keepdims=True), eps * eps))
    xn_bf16 = xn.astype(jnp.bfloat16)

    labels2d = labels.astype(jnp.int32).reshape(N, 1)

    # --- generation-aware VMEM budget ----------------------------------------
    lane = 128
    w_tile = S * cb * E * 2                      # bf16
    x_tile = row_block * E * 2                   # bf16
    lbl_tile = row_block * lane * 4
    out_tile = row_block * lane * 4
    scratch_bytes = 5 * row_block * lane * 4
    temp_bytes = 8 * row_block * cb * 4          # live (rb, cb) f32 temporaries
    est = 2 * (w_tile + x_tile + lbl_tile + 2 * out_tile) + scratch_bytes + temp_bytes
    try:
        vmem_cap = int(pltpu.get_tpu_info().vmem_capacity_bytes)
    except Exception:
        vmem_cap = 64 * 1024 * 1024              # conservative (v7x per-core VMEM)
    vmem_limit = int(min(max(2 * est, 32 * 1024 * 1024), int(0.75 * vmem_cap)))

    kernel = functools.partial(_amsm_kernel, scale=float(s), margin=float(m),
                               subcenters=S, n_classes=C)

    loss_rows, correct_rows = pl.pallas_call(
        kernel,
        out_shape=(jax.ShapeDtypeStruct((N, 1), jnp.float32),
                   jax.ShapeDtypeStruct((N, 1), jnp.int32)),
        grid_spec=pltpu.PrefetchScalarGridSpec(
            num_scalar_prefetch=0,
            grid=(R, J),
            in_specs=[
                pl.BlockSpec((row_block, E), lambda i, j: (i, 0)),   # xn (bf16)
                pl.BlockSpec((row_block, 1), lambda i, j: (i, 0)),   # labels
                pl.BlockSpec((S, cb, E), lambda i, j: (0, j, 0)),    # wn (bf16)
            ],
            out_specs=(
                pl.BlockSpec((row_block, 1), lambda i, j: (i, 0)),   # per-row loss
                pl.BlockSpec((row_block, 1), lambda i, j: (i, 0)),   # per-row hit
            ),
            scratch_shapes=[
                pltpu.VMEM((row_block, 1), jnp.float32),   # m_i (running max)
                pltpu.VMEM((row_block, 1), jnp.float32),   # l_i (running sum exp)
                pltpu.VMEM((row_block, 1), jnp.float32),   # label logit
                pltpu.VMEM((row_block, 1), jnp.float32),   # best cosine value
                pltpu.VMEM((row_block, 1), jnp.int32),     # best class index
            ]),
        compiler_params=pltpu.CompilerParams(
            dimension_semantics=("parallel", "arbitrary"),
            vmem_limit_bytes=vmem_limit),
    )(xn_bf16, labels2d, wn_bf16)

    loss = jnp.sum(loss_rows) / N
    acc1 = jnp.sum(correct_rows)
    return loss, acc1


def _reference(x, labels, W, s=35.0, m=0.2, matmul_dtype=jnp.float32):
    """Pure-JAX reference of the PyTorch module (optionally bf16 matmul)."""
    eps = 1e-12
    xn = x / jnp.maximum(jnp.linalg.norm(x, axis=-1, keepdims=True), eps)
    wn = W / jnp.maximum(jnp.linalg.norm(W, axis=-1, keepdims=True), eps)
    costh = jnp.einsum('ne,cse->ncs', xn.astype(matmul_dtype),
                       wn.astype(matmul_dtype),
                       preferred_element_type=jnp.float32).max(axis=-1)
    idx = jnp.argmax(costh, axis=1)
    acc = jnp.sum((idx == labels).astype(jnp.int32))
    onehot = jax.nn.one_hot(labels, costh.shape[1], dtype=costh.dtype)
    logits = s * (costh - m * onehot)
    lse = jax.scipy.special.logsumexp(logits, axis=1)
    lbl = jnp.take_along_axis(logits, labels[:, None], axis=1)[:, 0]
    return jnp.mean(lse - lbl), acc


if __name__ == "__main__":
    # small shapes consistent with the module (emb_size, n_classes, subcenters);
    # C=300 is not a multiple of 128 so padded-class masking is exercised.
    N, E, C, S = 16, 64, 300, 3
    scale, margin = 35.0, 0.2

    key = jax.random.PRNGKey(0)
    kx, kw, kl = jax.random.split(key, 3)

    x = jax.random.normal(kx, (N, E), dtype=jnp.float32)
    # deterministic xavier_uniform-style init for W (C, S, E)
    fan_in, fan_out = S * E, C * E
    bound = (6.0 / (fan_in + fan_out)) ** 0.5
    W = jax.random.uniform(kw, (C, S, E), minval=-bound, maxval=bound,
                           dtype=jnp.float32)
    labels = jax.random.randint(kl, (N,), 0, C, dtype=jnp.int32)

    # small tiles so the demo exercises several class blocks (online LSE +
    # padded-class masking) and several row blocks.
    loss, acc = angular_margin_softmax_loss(x, labels, W, s=scale, m=margin,
                                            class_block=128, row_block=8)
    jax.block_until_ready((loss, acc))

    # default (single-block) tiling must agree with the tiled run
    loss_d, acc_d = angular_margin_softmax_loss(x, labels, W, s=scale, m=margin)
    jax.block_until_ready((loss_d, acc_d))

    ref_loss_bf16, ref_acc_bf16 = _reference(x, labels, W, s=scale, m=margin,
                                             matmul_dtype=jnp.bfloat16)
    ref_loss_f32, _ = _reference(x, labels, W, s=scale, m=margin,
                                 matmul_dtype=jnp.float32)

    # tight check against the bf16-matmul reference (same quantization as kernel)
    assert jnp.allclose(loss, ref_loss_bf16, atol=2e-3, rtol=1e-4), (loss, ref_loss_bf16)
    assert int(acc) == int(ref_acc_bf16), (int(acc), int(ref_acc_bf16))
    # loose check against the full-f32 reference (bf16 MXU precision tradeoff)
    assert jnp.allclose(loss, ref_loss_f32, atol=5e-2, rtol=2e-2), (loss, ref_loss_f32)
    # both tilings agree
    assert jnp.allclose(loss, loss_d, atol=1e-3), (loss, loss_d)
    assert int(acc) == int(acc_d), (int(acc), int(acc_d))

    print("KERNEL_OK")
</pallas_src>

<mosaic_0001>
module attributes {stable_mosaic.version = 11 : i64} {
  func.func @_amsm_kernel(%arg0: i32, %arg1: i32, %arg2: memref<8x64xbf16, #tpu.memory_space<vmem>>, %arg3: memref<8x1xi32, #tpu.memory_space<vmem>>, %arg4: memref<3x128x64xbf16, #tpu.memory_space<vmem>>, %arg5: memref<8x1xf32, #tpu.memory_space<vmem>>, %arg6: memref<8x1xi32, #tpu.memory_space<vmem>>, %arg7: memref<8x1xf32, #tpu.memory_space<vmem>>, %arg8: memref<8x1xf32, #tpu.memory_space<vmem>>, %arg9: memref<8x1xf32, #tpu.memory_space<vmem>>, %arg10: memref<8x1xf32, #tpu.memory_space<vmem>>, %arg11: memref<8x1xi32, #tpu.memory_space<vmem>>) attributes {dimension_semantics = [#tpu.dimension_semantics<parallel>, #tpu.dimension_semantics<arbitrary>], iteration_bounds = array<i64: 2, 3>, scalar_prefetch = 0 : i64, scratch_operands = 5 : i64, tpu.core_type = #tpu.core_type<tc>, window_params = [{transform_indices = @transform_0, window_bounds = array<i64: 8, 64>}, {transform_indices = @transform_1, window_bounds = array<i64: 8, 1>}, {transform_indices = @transform_2, window_bounds = array<i64: 3, 128, 64>}, {transform_indices = @transform_3, window_bounds = array<i64: 8, 1>}, {transform_indices = @transform_4, window_bounds = array<i64: 8, 1>}]} {
    %c0_i32 = arith.constant 0 : i32
    %0 = arith.cmpi eq, %arg1, %c0_i32 : i32
    %1 = arith.extui %0 : i1 to i32
    %c0_i32_0 = arith.constant 0 : i32
    %2 = arith.cmpi ne, %1, %c0_i32_0 : i32
    scf.if %2 {
      %cst_49 = arith.constant 0xFF800000 : f32
      %86 = vector.broadcast %cst_49 : f32 to vector<8x1xf32>
      %c0_50 = arith.constant 0 : index
      %c0_51 = arith.constant 0 : index
      %87 = vector.load %arg7[%c0_50, %c0_51] : memref<8x1xf32, #tpu.memory_space<vmem>>, vector<8x1xf32>
      tpu.vector_store %arg7[%c0_50, %c0_51], %86 {strides = array<i32>} : memref<8x1xf32, #tpu.memory_space<vmem>>, vector<8x1xf32>,
      %cst_52 = arith.constant 0.000000e+00 : f32
      %88 = vector.broadcast %cst_52 : f32 to vector<8x1xf32>
      %c0_53 = arith.constant 0 : index
      %c0_54 = arith.constant 0 : index
      %89 = vector.load %arg8[%c0_53, %c0_54] : memref<8x1xf32, #tpu.memory_space<vmem>>, vector<8x1xf32>
      tpu.vector_store %arg8[%c0_53, %c0_54], %88 {strides = array<i32>} : memref<8x1xf32, #tpu.memory_space<vmem>>, vector<8x1xf32>,
      %cst_55 = arith.constant 0.000000e+00 : f32
      %90 = vector.broadcast %cst_55 : f32 to vector<8x1xf32>
      %c0_56 = arith.constant 0 : index
      %c0_57 = arith.constant 0 : index
      %91 = vector.load %arg9[%c0_56, %c0_57] : memref<8x1xf32, #tpu.memory_space<vmem>>, vector<8x1xf32>
      tpu.vector_store %arg9[%c0_56, %c0_57], %90 {strides = array<i32>} : memref<8x1xf32, #tpu.memory_space<vmem>>, vector<8x1xf32>,
      %cst_58 = arith.constant 0xFF800000 : f32
      %92 = vector.broadcast %cst_58 : f32 to vector<8x1xf32>
      %c0_59 = arith.constant 0 : index
      %c0_60 = arith.constant 0 : index
      %93 = vector.load %arg10[%c0_59, %c0_60] : memref<8x1xf32, #tpu.memory_space<vmem>>, vector<8x1xf32>
      tpu.vector_store %arg10[%c0_59, %c0_60], %92 {strides = array<i32>} : memref<8x1xf32, #tpu.memory_space<vmem>>, vector<8x1xf32>,
      %c0_i32_61 = arith.constant 0 : i32
      %94 = vector.broadcast %c0_i32_61 : i32 to vector<8x1xi32>
      %c0_62 = arith.constant 0 : index
      %c0_63 = arith.constant 0 : index
      %95 = vector.load %arg11[%c0_62, %c0_63] : memref<8x1xi32, #tpu.memory_space<vmem>>, vector<8x1xi32>
      tpu.vector_store %arg11[%c0_62, %c0_63], %94 {strides = array<i32>} : memref<8x1xi32, #tpu.memory_space<vmem>>, vector<8x1xi32>,
    } else {
    }
    %c0 = arith.constant 0 : index
    %c0_1 = arith.constant 0 : index
    %3 = vector.load %arg2[%c0, %c0_1] : memref<8x64xbf16, #tpu.memory_space<vmem>>, vector<8x64xbf16>
    %c0_2 = arith.constant 0 : index
    %c0_3 = arith.constant 0 : index
    %c0_4 = arith.constant 0 : index
    %4 = vector.load %arg4[%c0_2, %c0_3, %c0_4] : memref<3x128x64xbf16, #tpu.memory_space<vmem>>, vector<1x128x64xbf16>
    %5 = vector.shape_cast %4 : vector<1x128x64xbf16> to vector<128x64xbf16>
    %cst = arith.constant dense<0.000000e+00> : vector<8x128xf32>
    %6 = tpu.matmul %3, %5, %cst {dimension_numbers = #tpu.dot_dimension_numbers<[1], [1], [0], [0], [0, 0, 1, 0], [], []>} : vector<8x64xbf16>, vector<128x64xbf16>, vector<8x128xf32> -> vector<8x128xf32>
    %c1 = arith.constant 1 : index
    %c0_5 = arith.constant 0 : index
    %c0_6 = arith.constant 0 : index
    %7 = vector.load %arg4[%c1, %c0_5, %c0_6] : memref<3x128x64xbf16, #tpu.memory_space<vmem>>, vector<1x128x64xbf16>
    %8 = vector.shape_cast %7 : vector<1x128x64xbf16> to vector<128x64xbf16>
    %cst_7 = arith.constant dense<0.000000e+00> : vector<8x128xf32>
    %9 = tpu.matmul %3, %8, %cst_7 {dimension_numbers = #tpu.dot_dimension_numbers<[1], [1], [0], [0], [0, 0, 1, 0], [], []>} : vector<8x64xbf16>, vector<128x64xbf16>, vector<8x128xf32> -> vector<8x128xf32>
    %10 = arith.maximumf %6, %9 : vector<8x128xf32>
    %c2 = arith.constant 2 : index
    %c0_8 = arith.constant 0 : index
    %c0_9 = arith.constant 0 : index
    %11 = vector.load %arg4[%c2, %c0_8, %c0_9] : memref<3x128x64xbf16, #tpu.memory_space<vmem>>, vector<1x128x64xbf16>
    %12 = vector.shape_cast %11 : vector<1x128x64xbf16> to vector<128x64xbf16>
    %cst_10 = arith.constant dense<0.000000e+00> : vector<8x128xf32>
    %13 = tpu.matmul %3, %12, %cst_10 {dimension_numbers = #tpu.dot_dimension_numbers<[1], [1], [0], [0], [0, 0, 1, 0], [], []>} : vector<8x64xbf16>, vector<128x64xbf16>, vector<8x128xf32> -> vector<8x128xf32>
    %14 = arith.maximumf %10, %13 : vector<8x128xf32>
    %c128_i32 = arith.constant 128 : i32
    %15 = arith.muli %arg1, %c128_i32 : i32
    %16 = tpu.iota {dimensions = array<i32: 1>} : vector<1x128xi32>
    %17 = vector.broadcast %15 : i32 to vector<1x128xi32>
    %18 = arith.addi %17, %16 : vector<1x128xi32>
    %c300_i32 = arith.constant 300 : i32
    %19 = vector.broadcast %c300_i32 : i32 to vector<1x128xi32>
    %20 = arith.cmpi slt, %18, %19 : vector<1x128xi32>
    %c0_11 = arith.constant 0 : index
    %c0_12 = arith.constant 0 : index
    %21 = vector.load %arg3[%c0_11, %c0_12] : memref<8x1xi32, #tpu.memory_space<vmem>>, vector<8x1xi32>
    %22 = vector.broadcast %18 : vector<1x128xi32> to vector<8x128xi32>
    %23 = vector.broadcast %21 : vector<8x1xi32> to vector<8x128xi32>
    %24 = arith.cmpi eq, %22, %23 : vector<8x128xi32>
    %25 = vector.broadcast %20 : vector<1x128xi1> to vector<8x128xi1>
    %26 = arith.andi %25, %24 : vector<8x128xi1>
    %cst_13 = arith.constant 0xFF800000 : f32
    %27 = vector.shape_cast %20 : vector<1x128xi1> to vector<1x128xi1>
    %28 = vector.broadcast %27 : vector<1x128xi1> to vector<8x128xi1>
    %29 = vector.broadcast %cst_13 : f32 to vector<8x128xf32>
    %30 = arith.select %28, %14, %29 : vector<8x128xi1>, vector<8x128xf32>
    %cst_14 = arith.constant dense<0xFF800000> : vector<8xf32>
    %31 = vector.multi_reduction <maximumf>, %30, %cst_14 [1] : vector<8x128xf32> to vector<8xf32>
    %32 = vector.shape_cast %31 : vector<8xf32> to vector<8x1xf32>
    %33 = vector.broadcast %32 : vector<8x1xf32> to vector<8x128xf32>
    %34 = arith.cmpf oeq, %30, %33 : vector<8x128xf32>
    %c1073741824_i32 = arith.constant 1073741824 : i32
    %35 = vector.shape_cast %18 : vector<1x128xi32> to vector<1x128xi32>
    %36 = vector.broadcast %35 : vector<1x128xi32> to vector<8x128xi32>
    %37 = vector.broadcast %c1073741824_i32 : i32 to vector<8x128xi32>
    %38 = arith.select %34, %36, %37 : vector<8x128xi1>, vector<8x128xi32>
    %cst_15 = arith.constant dense<2147483647> : vector<8xi32>
    %39 = vector.multi_reduction <minsi>, %38, %cst_15 [1] : vector<8x128xi32> to vector<8xi32>
    %40 = vector.shape_cast %39 : vector<8xi32> to vector<8x1xi32>
    %c0_16 = arith.constant 0 : index
    %c0_17 = arith.constant 0 : index
    %41 = vector.load %arg10[%c0_16, %c0_17] : memref<8x1xf32, #tpu.memory_space<vmem>>, vector<8x1xf32>
    %42 = arith.cmpf ogt, %32, %41 : vector<8x1xf32>
    %c0_18 = arith.constant 0 : index
    %c0_19 = arith.constant 0 : index
    %43 = vector.load %arg11[%c0_18, %c0_19] : memref<8x1xi32, #tpu.memory_space<vmem>>, vector<8x1xi32>
    %44 = arith.select %42, %40, %43 : vector<8x1xi1>, vector<8x1xi32>
    %c0_20 = arith.constant 0 : index
    %c0_21 = arith.constant 0 : index
    %45 = vector.load %arg11[%c0_20, %c0_21] : memref<8x1xi32, #tpu.memory_space<vmem>>, vector<8x1xi32>
    tpu.vector_store %arg11[%c0_20, %c0_21], %44 {strides = array<i32>} : memref<8x1xi32, #tpu.memory_space<vmem>>, vector<8x1xi32>,
    %c0_22 = arith.constant 0 : index
    %c0_23 = arith.constant 0 : index
    %46 = vector.load %arg10[%c0_22, %c0_23] : memref<8x1xf32, #tpu.memory_space<vmem>>, vector<8x1xf32>
    %47 = arith.select %42, %32, %46 : vector<8x1xi1>, vector<8x1xf32>
    %c0_24 = arith.constant 0 : index
    %c0_25 = arith.constant 0 : index
    %48 = vector.load %arg10[%c0_24, %c0_25] : memref<8x1xf32, #tpu.memory_space<vmem>>, vector<8x1xf32>
    tpu.vector_store %arg10[%c0_24, %c0_25], %47 {strides = array<i32>} : memref<8x1xf32, #tpu.memory_space<vmem>>, vector<8x1xf32>,
    %cst_26 = arith.constant 2.000000e-01 : f32
    %cst_27 = arith.constant 0.000000e+00 : f32
    %49 = vector.broadcast %cst_26 : f32 to vector<8x128xf32>
    %50 = vector.broadcast %cst_27 : f32 to vector<8x128xf32>
    %51 = arith.select %26, %49, %50 : vector<8x128xi1>, vector<8x128xf32>
    %52 = arith.subf %14, %51 : vector<8x128xf32>
    %cst_28 = arith.constant 3.500000e+01 : f32
    %53 = vector.broadcast %cst_28 : f32 to vector<8x128xf32>
    %54 = arith.mulf %53, %52 : vector<8x128xf32>
    %cst_29 = arith.constant 0xFF800000 : f32
    %55 = vector.shape_cast %20 : vector<1x128xi1> to vector<1x128xi1>
    %56 = vector.broadcast %55 : vector<1x128xi1> to vector<8x128xi1>
    %57 = vector.broadcast %cst_29 : f32 to vector<8x128xf32>
    %58 = arith.select %56, %54, %57 : vector<8x128xi1>, vector<8x128xf32>
    %c0_30 = arith.constant 0 : index
    %c0_31 = arith.constant 0 : index
    %59 = vector.load %arg9[%c0_30, %c0_31] : memref<8x1xf32, #tpu.memory_space<vmem>>, vector<8x1xf32>
    %cst_32 = arith.constant 0.000000e+00 : f32
    %60 = vector.broadcast %cst_32 : f32 to vector<8x128xf32>
    %61 = arith.select %26, %58, %60 : vector<8x128xi1>, vector<8x128xf32>
    %cst_33 = arith.constant dense<0.000000e+00> : vector<8xf32>
    %62 = vector.multi_reduction <add>, %61, %cst_33 [1] : vector<8x128xf32> to vector<8xf32>
    %63 = vector.shape_cast %62 : vector<8xf32> to vector<8x1xf32>
    %64 = arith.addf %59, %63 : vector<8x1xf32>
    %c0_34 = arith.constant 0 : index
    %c0_35 = arith.constant 0 : index
    %65 = vector.load %arg9[%c0_34, %c0_35] : memref<8x1xf32, #tpu.memory_space<vmem>>, vector<8x1xf32>
    tpu.vector_store %arg9[%c0_34, %c0_35], %64 {strides = array<i32>} : memref<8x1xf32, #tpu.memory_space<vmem>>, vector<8x1xf32>,
    %c0_36 = arith.constant 0 : index
    %c0_37 = arith.constant 0 : index
    %66 = vector.load %arg7[%c0_36, %c0_37] : memref<8x1xf32, #tpu.memory_space<vmem>>, vector<8x1xf32>
    %cst_38 = arith.constant 3.500000e+01 : f32
    %67 = vector.broadcast %cst_38 : f32 to vector<8x1xf32>
    %68 = arith.mulf %67, %32 : vector<8x1xf32>
    %69 = arith.maximumf %66, %68 : vector<8x1xf32>
    %c0_39 = arith.constant 0 : index
    %c0_40 = arith.constant 0 : index
    %70 = vector.load %arg8[%c0_39, %c0_40] : memref<8x1xf32, #tpu.memory_space<vmem>>, vector<8x1xf32>
    %c0_41 = arith.constant 0 : index
    %c0_42 = arith.constant 0 : index
    %71 = vector.load %arg7[%c0_41, %c0_42] : memref<8x1xf32, #tpu.memory_space<vmem>>, vector<8x1xf32>
    %72 = arith.subf %71, %69 : vector<8x1xf32>
    %73 = math.exp %72 : vector<8x1xf32>
    %74 = arith.mulf %70, %73 : vector<8x1xf32>
    %75 = vector.broadcast %69 : vector<8x1xf32> to vector<8x128xf32>
    %76 = arith.subf %58, %75 : vector<8x128xf32>
    %77 = math.exp %76 : vector<8x128xf32>
    %cst_43 = arith.constant dense<0.000000e+00> : vector<8xf32>
    %78 = vector.multi_reduction <add>, %77, %cst_43 [1] : vector<8x128xf32> to vector<8xf32>
    %79 = vector.shape_cast %78 : vector<8xf32> to vector<8x1xf32>
    %80 = arith.addf %74, %79 : vector<8x1xf32>
    %c0_44 = arith.constant 0 : index
    %c0_45 = arith.constant 0 : index
    %81 = vector.load %arg8[%c0_44, %c0_45] : memref<8x1xf32, #tpu.memory_space<vmem>>, vector<8x1xf32>
    tpu.vector_store %arg8[%c0_44, %c0_45], %80 {strides = array<i32>} : memref<8x1xf32, #tpu.memory_space<vmem>>, vector<8x1xf32>,
    %c0_46 = arith.constant 0 : index
    %c0_47 = arith.constant 0 : index
    %82 = vector.load %arg7[%c0_46, %c0_47] : memref<8x1xf32, #tpu.memory_space<vmem>>, vector<8x1xf32>
    tpu.vector_store %arg7[%c0_46, %c0_47], %69 {strides = array<i32>} : memref<8x1xf32, #tpu.memory_space<vmem>>, vector<8x1xf32>,
    %c2_i32 = arith.constant 2 : i32
    %83 = arith.cmpi eq, %arg1, %c2_i32 : i32
    %84 = arith.extui %83 : i1 to i32
    %c0_i32_48 = arith.constant 0 : i32
    %85 = arith.cmpi ne, %84, %c0_i32_48 : i32
    scf.if %85 {
      %c0_49 = arith.constant 0 : index
      %c0_50 = arith.constant 0 : index
      %86 = vector.load %arg7[%c0_49, %c0_50] : memref<8x1xf32, #tpu.memory_space<vmem>>, vector<8x1xf32>
      %c0_51 = arith.constant 0 : index
      %c0_52 = arith.constant 0 : index
      %87 = vector.load %arg8[%c0_51, %c0_52] : memref<8x1xf32, #tpu.memory_space<vmem>>, vector<8x1xf32>
      %88 = math.log %87 : vector<8x1xf32>
      %89 = arith.addf %86, %88 : vector<8x1xf32>
      %c0_53 = arith.constant 0 : index
      %c0_54 = arith.constant 0 : index
      %90 = vector.load %arg9[%c0_53, %c0_54] : memref<8x1xf32, #tpu.memory_space<vmem>>, vector<8x1xf32>
      %91 = arith.subf %89, %90 : vector<8x1xf32>
      %c0_55 = arith.constant 0 : index
      %c0_56 = arith.constant 0 : index
      %92 = vector.load %arg5[%c0_55, %c0_56] : memref<8x1xf32, #tpu.memory_space<vmem>>, vector<8x1xf32>
      tpu.vector_store %arg5[%c0_55, %c0_56], %91 {strides = array<i32>} : memref<8x1xf32, #tpu.memory_space<vmem>>, vector<8x1xf32>,
      %c0_57 = arith.constant 0 : index
      %c0_58 = arith.constant 0 : index
      %93 = vector.load %arg11[%c0_57, %c0_58] : memref<8x1xi32, #tpu.memory_space<vmem>>, vector<8x1xi32>
      %94 = arith.cmpi eq, %93, %21 : vector<8x1xi32>
      %95 = arith.extui %94 : vector<8x1xi1> to vector<8x1xi32>
      %c0_59 = arith.constant 0 : index
      %c0_60 = arith.constant 0 : index
      %96 = vector.load %arg6[%c0_59, %c0_60] : memref<8x1xi32, #tpu.memory_space<vmem>>, vector<8x1xi32>
      tpu.vector_store %arg6[%c0_59, %c0_60], %95 {strides = array<i32>} : memref<8x1xi32, #tpu.memory_space<vmem>>, vector<8x1xi32>,
    } else {
    }
    return
  }
  func.func @transform_0(%arg0: i32, %arg1: i32) -> (i32, i32) {
    %c0_i32 = arith.constant 0 : i32
    %c0_i32_0 = arith.constant 0 : i32
    return %arg0, %c0_i32 : i32, i32
  }
  func.func @transform_1(%arg0: i32, %arg1: i32) -> (i32, i32) {
    %c0_i32 = arith.constant 0 : i32
    %c0_i32_0 = arith.constant 0 : i32
    return %arg0, %c0_i32 : i32, i32
  }
  func.func @transform_2(%arg0: i32, %arg1: i32) -> (i32, i32, i32) {
    %c0_i32 = arith.constant 0 : i32
    %c0_i32_0 = arith.constant 0 : i32
    %c0_i32_1 = arith.constant 0 : i32
    return %c0_i32, %arg1, %c0_i32_0 : i32, i32, i32
  }
  func.func @transform_3(%arg0: i32, %arg1: i32) -> (i32, i32) {
    %c0_i32 = arith.constant 0 : i32
    %c0_i32_0 = arith.constant 0 : i32
    return %arg0, %c0_i32 : i32, i32
  }
  func.func @transform_4(%arg0: i32, %arg1: i32) -> (i32, i32) {
    %c0_i32 = arith.constant 0 : i32
    %c0_i32_0 = arith.constant 0 : i32
    return %arg0, %c0_i32 : i32, i32
  }
}

</mosaic_0001>

<bundles_post_ra>
// kernel: tpu_custom_call.1
= control target key start
LH: loop header
LB: loop body
LE: loop exit
PB: predicated region body
PF: predicated region fallthrough
CT: control target
= control target key end

     0   :  { %s1329_s15 = smov 0   ;;  %s1331_s16 = smov 0   ;;  %s1571_s0 = inlined_call_operand.vmem [shape: bf16[16,64], index: 0, kind: input, shape index: {}]   ;;  %s1572_s1 = inlined_call_operand.vmem [shape: s32[16,1], index: 1, kind: input, shape index: {}]   ;;  %s1573_s2 = inlined_call_operand.vmem [shape: bf16[3,384,64], index: 2, kind: input, shape index: {}]   ;;  %s1574_s3 = inlined_call_operand.vmem [shape: f32[16,1], index: 3, kind: output, shape index: {0}]   ;;  %s1575_s4 = inlined_call_operand.vmem [shape: s32[16,1], index: 4, kind: output, shape index: {1}]  }
   0x1   :  { %s1333_s17 = smov 0   ;;  %s1335_s18 = smov 0  }
   0x2   :  { %s1337_s19 = smov 0   ;;  %s1339_s20 = smov 0  }
   0x3   :  { %s1341_s21 = smov 0  }
   0x4 LB: > { %s24_s22 = sadd.s32 1, %s1288_s19  ;;  %s27_s23 = sadd.s32 1, %s1292_s20  ;;  %s1296_s21 = sphi %s1341_s21, %s15_s21   ;;  %s1292_s20 = sphi %s1339_s20, %s1581_s20   ;;  %s1288_s19 = sphi %s1337_s19, %s1580_s19   ;;  %s1284_s18 = sphi %s1335_s18, %s1579_s18   ;;  %s1280_s17 = sphi %s1333_s17, %s1578_s17   ;;  %s1276_s16 = sphi %s1331_s16, %s1577_s16   ;;  %s1272_s15 = sphi %s1329_s15, %s1576_s15  }
   0x5   : > { %p25_p0 = scmp.ge.s32.totalorder %s24_s22, 3  ;;  %s86_s24 = sadd.s32 1, %s1276_s16 }
   0x6   : > { %p93_p1 = scmp.ne.s32.totalorder %s1276_s16, %s1272_s15  ;;  %p94_p2 = scmp.eq.s32.totalorder %s1296_s21, 0 }
   0x7   : > { %s1583_s22 = smov (%p25_p0, %s24_s22), 0  ;;  %s1585_s23 = smov (!%p25_p0, %s27_s23), %s1292_s20 }
   0x8   : > { %s83_s25 = ssub.s32 %s1288_s19, %s1583_s22  ;;  %p95_p3 = por %p94_p2, %p93_p1 }
   0x9   : > { %p29_p4 = scmp.ge.s32.totalorder %s1585_s23, 2  ;;  %p84_p5 = scmp.eq.s32.totalorder %s83_s25, 0 }
   0xa   : > { %p1001_p6 = scmp.ge.s32.totalorder %s1296_s21, 6 }
   0xb   : > { %s1587_s23 = smov (%p29_p4, %s1585_s23), 0 }
   0xc   : > { %s1378_s26 = scalar_select %p84_p5, %s1276_s16, %s86_s24  }
   0xd   : > { %171 = sbr.rel (%p1001_p6) target bundleno = 46 (0x2e), region = 16 }
  0x12   : > { %188 = sbr.rel (!%p95_p3) target bundleno = 46 (0x2e), region = 28  ;;  %s190_s27 = sand.u32 (%p95_p3), 1, %s1276_s16  }
  0x13   : > { %s1145_s28 = sshll.u32 (%p95_p3), %s1288_s19, 6  ;;  %s1170_s29 = smul.u32 (%p95_p3), 192, %s190_s27 }
  0x14   : > { %s1386_s6 = scalar_lea.vmem (%p95_p3), %s1573_s2, %s1145_s28 }
  0x15   : > { %v212_v0 = vld [vmem:[%s1386_s6] sm:$0xff] (%p95_p3)   ;;  %v216_v1 = vld [vmem:[%s1386_s6 + $0x8] sm:$0xff] (%p95_p3)   ;;  %v220_v2 = vld [vmem:[%s1386_s6 + $0x10] sm:$0xff] (%p95_p3)   ;;  %s1391_s7 = scalar_lea.vmem (%p95_p3), [#allocation7], %s1170_s29 }
  0x16   : > { %213 = vst [vmem:[%s1391_s7] sm:$0xff] (%p95_p3), %v212_v0   ;;  %v224_v3 = vld [vmem:[%s1386_s6 + $0x18] sm:$0xff] (%p95_p3)   ;;  %v228_v4 = vld [vmem:[%s1386_s6 + $0x20] sm:$0xff] (%p95_p3)   ;;  %v232_v5 = vld [vmem:[%s1386_s6 + $0x28] sm:$0xff] (%p95_p3)  }
  0x17   : > { %217 = vst [vmem:[%s1391_s7 + $0x8] sm:$0xff] %v216_v1   ;;  %v236_v6 = vld [vmem:[%s1386_s6 + $0x30] sm:$0xff]   ;;  %v240_v7 = vld [vmem:[%s1386_s6 + $0x38] sm:$0xff]   ;;  %v244_v8 = vld [vmem:[%s1386_s6 + $0xc0] sm:$0xff]  }
  0x18   : > { %221 = vst [vmem:[%s1391_s7 + $0x10] sm:$0xff] %v220_v2   ;;  %v248_v9 = vld [vmem:[%s1386_s6 + $0xc8] sm:$0xff]   ;;  %v252_v10 = vld [vmem:[%s1386_s6 + $0xd0] sm:$0xff]   ;;  %v256_v11 = vld [vmem:[%s1386_s6 + $0xd8] sm:$0xff]  }
  0x19   : > { %225 = vst [vmem:[%s1391_s7 + $0x18] sm:$0xff] %v224_v3   ;;  %v260_v12 = vld [vmem:[%s1386_s6 + $0xe0] sm:$0xff]   ;;  %v264_v13 = vld [vmem:[%s1386_s6 + $0xe8] sm:$0xff]   ;;  %v268_v14 = vld [vmem:[%s1386_s6 + $0xf0] sm:$0xff]  }
  0x1a   : > { %229 = vst [vmem:[%s1391_s7 + $0x20] sm:$0xff] %v228_v4   ;;  %v272_v15 = vld [vmem:[%s1386_s6 + $0xf8] sm:$0xff]   ;;  %v276_v16 = vld [vmem:[%s1386_s6 + $0x180] sm:$0xff]   ;;  %v280_v17 = vld [vmem:[%s1386_s6 + $0x188] sm:$0xff]  }
  0x1b   : > { %233 = vst [vmem:[%s1391_s7 + $0x28] sm:$0xff] %v232_v5   ;;  %v284_v18 = vld [vmem:[%s1386_s6 + $0x190] sm:$0xff]   ;;  %v288_v19 = vld [vmem:[%s1386_s6 + $0x198] sm:$0xff]   ;;  %v292_v20 = vld [vmem:[%s1386_s6 + $0x1a0] sm:$0xff]  }
  0x1c   : > { %237 = vst [vmem:[%s1391_s7 + $0x30] sm:$0xff] %v236_v6   ;;  %v296_v21 = vld [vmem:[%s1386_s6 + $0x1a8] sm:$0xff]   ;;  %v300_v22 = vld [vmem:[%s1386_s6 + $0x1b0] sm:$0xff]   ;;  %v304_v23 = vld [vmem:[%s1386_s6 + $0x1b8] sm:$0xff]  }
  0x1d   : > { %241 = vst [vmem:[%s1391_s7 + $0x38] sm:$0xff] %v240_v7  }
  0x1e   : > { %245 = vst [vmem:[%s1391_s7 + $0x40] sm:$0xff] %v244_v8  }
  0x1f   : > { %249 = vst [vmem:[%s1391_s7 + $0x48] sm:$0xff] %v248_v9  }
  0x20   : > { %253 = vst [vmem:[%s1391_s7 + $0x50] sm:$0xff] %v252_v10  }
  0x21   : > { %257 = vst [vmem:[%s1391_s7 + $0x58] sm:$0xff] %v256_v11  }
  0x22   : > { %261 = vst [vmem:[%s1391_s7 + $0x60] sm:$0xff] %v260_v12  }
  0x23   : > { %265 = vst [vmem:[%s1391_s7 + $0x68] sm:$0xff] %v264_v13  }
  0x24   : > { %269 = vst [vmem:[%s1391_s7 + $0x70] sm:$0xff] %v268_v14  }
  0x25   : > { %273 = vst [vmem:[%s1391_s7 + $0x78] sm:$0xff] %v272_v15  }
  0x26   : > { %277 = vst [vmem:[%s1391_s7 + $0x80] sm:$0xff] %v276_v16  }
  0x27   : > { %281 = vst [vmem:[%s1391_s7 + $0x88] sm:$0xff] %v280_v17  }
  0x28   : > { %285 = vst [vmem:[%s1391_s7 + $0x90] sm:$0xff] %v284_v18  }
  0x29   : > { %289 = vst [vmem:[%s1391_s7 + $0x98] sm:$0xff] %v288_v19  }
  0x2a   : > { %293 = vst [vmem:[%s1391_s7 + $0xa0] sm:$0xff] %v292_v20  }
  0x2b   : > { %297 = vst [vmem:[%s1391_s7 + $0xa8] sm:$0xff] %v296_v21  }
  0x2c   : > { %301 = vst [vmem:[%s1391_s7 + $0xb0] sm:$0xff] %v300_v22  }
  0x2d   : > { %305 = vst [vmem:[%s1391_s7 + $0xb8] sm:$0xff] %v304_v23  }
  0x2e PF: > { %p1004_p7 = scmp.ge.s32.totalorder %s1296_s21, 1  ;;  %p426_p8 = scmp.lt.s32.totalorder %s1296_s21, 7 }
  0x30   : > { %p427_p9 = pnand %p1004_p7, %p426_p8 }
  0x31   : > { %s433_s8 = sand.u32 (!%p427_p9), 1, %s1272_s15   ;;  %p469_p10 = scmp.lt.s32.totalorder (!%p427_p9), %s1284_s18, 1 }
  0x32   : > { %430 = sbr.rel (%p427_p9) target bundleno = 696 (0x2b8), region = 69  ;;  %p1009_p11 = scmp.ne.s32.totalorder (!%p427_p9), %s1280_s17, 0 }
  0x33   : > { %s1171_s9 = smul.u32 (!%p427_p9), 192, %s433_s8 }
  0x35   : > { %s1462_s6 = scalar_lea.vmem (!%p427_p9), [#allocation7], %s1171_s9 }
  0x37   : > { %s1589_s18 = smov (!%p469_p10, %s1284_s18), 1  ;;  %489 = sbr.rel (%p1009_p11) target bundleno = 66 (0x42), region = 77 }
  0x38   : > { %s1005_s10 = sshll.u32 %s1589_s18, 2  ;;  %s1443_s11 = sshll.u32 %s1589_s18, 3 }
  0x39   : > { %s1448_s14 = scalar_lea.vmem %s1571_s0, %s1005_s10  ;;  %s476_s27 = scalar_lea.vmem %s1572_s1, %s1443_s11 }
  0x3a   : > { %s481_s29 = scalar_lea.vmem %s1574_s3, %s1443_s11  ;;  %s485_s18 = scalar_lea.vmem %s1575_s4, %s1443_s11 }
  0x3c   : > { %vm490_vm0 = vcmask 7168   ;;  %v1298_v24 = vmov -inf   ;;  %v1299_v25 = vmov 0.0   ;;  %v1300_v26 = vmov 0  }
  0x3d   : > { %491 = vst.msk [vmem:[#allocation2] sm:$0xff] %vm490_vm0, %v1298_v24 }
  0x3e   : > { %494 = vst.msk [vmem:[#allocation5] sm:$0xff] %vm490_vm0, %v1298_v24 }
  0x3f   : > { %492 = vst.msk [vmem:[#allocation3] sm:$0xff] %vm490_vm0, %v1299_v25 }
  0x40   : > { %493 = vst.msk [vmem:[#allocation4] sm:$0xff] %vm490_vm0, %v1299_v25 }
  0x41   : > { %495 = vst.msk [vmem:[#allocation6] sm:$0xff] %vm490_vm0, %v1300_v26 }
  0x42 PF: > { %v1153_v27 = vld [vmem:[%s1462_s6 + $0x38] sm:$0xff]  ;;  %vm553_vm1 = vcmask 523264   ;;  %v1152_v33 = vld [vmem:[%s1462_s6 + $0x30] sm:$0xff]  ;;  %v1151_v39 = vld [vmem:[%s1462_s6 + $0x28] sm:$0xff]  ;;  %v1301_v12 = vmov 0   ;;  %v785_v13 = vlaneseq  ;;  %s1141_s7 = sshll.u32 %s1280_s17, 7 }
  0x43   : > { %v1161_v28 = vld [vmem:[%s1462_s6 + $0x78] sm:$0xff]  ;;  %v579_v30 = vsel %vm553_vm1, %v1153_v27, 0  ;;  %v1160_v34 = vld [vmem:[%s1462_s6 + $0x70] sm:$0xff]  ;;  %v576_v36 = vsel %vm553_vm1, %v1152_v33, 0  ;;  %v1159_v40 = vld [vmem:[%s1462_s6 + $0x68] sm:$0xff]  ;;  %v573_v42 = vsel %vm553_vm1, %v1151_v39, 0  ;;  %1234 = vset.pattern.permute.xlu0 %v1301_v12  ;;  %1235 = vset.pattern.permute.xlu1 %v1301_v12  ;;  %v787_v17 = vstv %s1141_s7 }
  0x44   : > { %v1169_v29 = vld [vmem:[%s1462_s6 + $0xb8] sm:$0xff]  ;;  %v673_v31 = vsel %vm553_vm1, %v1161_v28, 0  ;;  %581 = vmatpush.bf16.xpose.msra.mxu0 %v579_v30  ;;  %v1168_v35 = vld [vmem:[%s1462_s6 + $0xb0] sm:$0xff]  ;;  %v670_v37 = vsel %vm553_vm1, %v1160_v34, 0  ;;  %v1167_v41 = vld [vmem:[%s1462_s6 + $0xa8] sm:$0xff]  ;;  %v667_v43 = vsel %vm553_vm1, %v1159_v40, 0 }
  0x45   : > { %v768_v32 = vsel %vm553_vm1, %v1169_v29, 0  ;;  %675 = vmatpush.bf16.xpose.msra.mxu1 %v673_v31  ;;  %v765_v38 = vsel %vm553_vm1, %v1168_v35, 0  ;;  %v762_v44 = vsel %vm553_vm1, %v1167_v41, 0  ;;  %v1150_v45 = vld [vmem:[%s1462_s6 + $0x20] sm:$0xff]  ;;  %v1149_v51 = vld [vmem:[%s1462_s6 + $0x18] sm:$0xff]  ;;  %v1148_v57 = vld [vmem:[%s1462_s6 + $0x10] sm:$0xff] }
  0x46   : > { %770 = vmatpush.bf16.xpose.msra.mxu2 %v768_v32  ;;  %v1158_v46 = vld [vmem:[%s1462_s6 + $0x60] sm:$0xff]  ;;  %v570_v48 = vsel %vm553_vm1, %v1150_v45, 0  ;;  %v1157_v52 = vld [vmem:[%s1462_s6 + $0x58] sm:$0xff]  ;;  %v567_v54 = vsel %vm553_vm1, %v1149_v51, 0  ;;  %v1156_v58 = vld [vmem:[%s1462_s6 + $0x50] sm:$0xff]  ;;  %v564_v60 = vsel %vm553_vm1, %v1148_v57, 0 }
  0x47   : > { %v1166_v47 = vld [vmem:[%s1462_s6 + $0xa0] sm:$0xff]  ;;  %v664_v49 = vsel %vm553_vm1, %v1158_v46, 0  ;;  %v1165_v53 = vld [vmem:[%s1462_s6 + $0x98] sm:$0xff]  ;;  %v661_v55 = vsel %vm553_vm1, %v1157_v52, 0  ;;  %v1164_v59 = vld [vmem:[%s1462_s6 + $0x90] sm:$0xff]  ;;  %v658_v61 = vsel %vm553_vm1, %v1156_v58, 0 }
  0x48   : > { %v759_v50 = vsel %vm553_vm1, %v1166_v47, 0  ;;  %v756_v56 = vsel %vm553_vm1, %v1165_v53, 0  ;;  %v753_v62 = vsel %vm553_vm1, %v1164_v59, 0  ;;  %v1147_v63 = vld [vmem:[%s1462_s6 + $0x8] sm:$0xff]  ;;  %v1146_v5 = vld [vmem:[%s1462_s6] sm:$0xff]  ;;  %v786_v14 = vand.u32 127, %v785_v13 }
  0x49   : > { %v1155_v0 = vld [vmem:[%s1462_s6 + $0x48] sm:$0xff]  ;;  %v561_v2 = vsel %vm553_vm1, %v1147_v63, 0  ;;  %v1154_v6 = vld [vmem:[%s1462_s6 + $0x40] sm:$0xff]  ;;  %v558_v8 = vsel %vm553_vm1, %v1146_v5, 0  ;;  %v496_v11 = vld [vmem:[%s1448_s14] sm:$0xf] }
  0x4a   : > { %v1163_v1 = vld [vmem:[%s1462_s6 + $0x88] sm:$0xff]  ;;  %v655_v3 = vsel %vm553_vm1, %v1155_v0, 0  ;;  %v1162_v7 = vld [vmem:[%s1462_s6 + $0x80] sm:$0xff]  ;;  %v652_v9 = vsel %vm553_vm1, %v1154_v6, 0  ;;  %v788_v18 = vadd.s32 %v787_v17, %v786_v14  ;;  %v1524_v26 = vld [vmem:[%s476_s27] sm:$0xff]  ;;  %vm821_vm3 = vcmask 7168  }
  0x4b   : > { %v750_v4 = vsel %vm553_vm1, %v1163_v1, 0  ;;  %v747_v10 = vsel %vm553_vm1, %v1162_v7, 0  ;;  %v817_v27 = vld [vmem:[#allocation5] sm:$0xff]  ;;  %v836_v29 = vld [vmem:[#allocation2] sm:$0xff]  ;;  %v1302_v35 = vmov 0.0   ;;  %v839_v63 = vld [vmem:[#allocation3] sm:$0xff] }
  0x4c   : > { %582 = vmatpush.bf16.xpose.msra.mxu0 %v576_v36  ;;  %vm789_vm2 = vcmp.lt.s32.totalorder %v788_v18, 300  ;;  %p1142_p12 = scmp.ne.s32.totalorder %s1280_s17, 2 }
  0x4d   : > { %676 = vmatpush.bf16.xpose.msra.mxu1 %v670_v37 }
  0x4e   : > { %771 = vmatpush.bf16.xpose.msra.mxu2 %v765_v38 }
  0x54   : > { %583 = vmatpush.bf16.xpose.msra.mxu0 %v573_v42 }
  0x55   : > { %677 = vmatpush.bf16.xpose.msra.mxu1 %v667_v43 }
  0x56   : > { %772 = vmatpush.bf16.xpose.msra.mxu2 %v762_v44  ;;  %v830_v44 = vld [vmem:[#allocation4] sm:$0xff] }
  0x5c   : > { %584 = vmatpush.bf16.xpose.msra.mxu0 %v570_v48 }
  0x5d   : > { %678 = vmatpush.bf16.xpose.msra.mxu1 %v664_v49 }
  0x5e   : > { %773 = vmatpush.bf16.xpose.msra.mxu2 %v759_v50 }
  0x64   : > { %585 = vmatpush.bf16.xpose.msra.mxu0 %v567_v54 }
  0x65   : > { %679 = vmatpush.bf16.xpose.msra.mxu1 %v661_v55 }
  0x66   : > { %774 = vmatpush.bf16.xpose.msra.mxu2 %v756_v56 }
  0x6c   : > { %586 = vmatpush.bf16.xpose.msra.mxu0 %v564_v60  ;;  %v819_v60 = vld [vmem:[#allocation6] sm:$0xff] }
  0x6d   : > { %680 = vmatpush.bf16.xpose.msra.mxu1 %v658_v61 }
  0x6e   : > { %775 = vmatpush.bf16.xpose.msra.mxu2 %v753_v62 }
  0x74   : > { %587 = vmatpush.bf16.xpose.msra.mxu0 %v561_v2 }
  0x75   : > { %681 = vmatpush.bf16.xpose.msra.mxu1 %v655_v3 }
  0x76   : > { %776 = vmatpush.bf16.xpose.msra.mxu2 %v750_v4 }
  0x7c   : > { %588 = vmatpush.bf16.xpose.msra.mxu0 %v558_v8 }
  0x7d   : > { %682 = vmatpush.bf16.xpose.msra.mxu1 %v652_v9 }
  0x7e   : > { %777 = vmatpush.bf16.xpose.msra.mxu2 %v747_v10 }
  0x83   : > { %1042 = vmatmul.msk.bf16.vlgmr.msra.gmra.mxu0 %vm553_vm1, %v496_v11 }
  0x84   : > { %1091 = vmatmul.msk.bf16.vlgmr.msra.gmra.mxu1 %vm553_vm1, %v496_v11 }
  0x85   : > { %1140 = vmatmul.msk.bf16.vlgmr.msra.gmra.mxu2 %vm553_vm1, %v496_v11 }
 0x100   : > { %v590_v15 = vpop.f32.mrf.mxu0 }
 0x101   : > { %v684_v16 = vpop.f32.mrf.mxu1 }
 0x102   : > { %v688_v19 = vmax.f32 %v590_v15, %v684_v16 }
 0x108   : > { %v779_v20 = vpop.f32.mrf.mxu2  ;;  %v592_v22 = vpop.f32.mrf.mxu0 }
 0x109   : > { %v783_v21 = vmax.f32 %v688_v19, %v779_v20  ;;  %v686_v23 = vpop.f32.mrf.mxu1 }
 0x10b   : > { %v798_v24 = vsel %vm789_vm2, %v783_v21, -inf }
 0x10c   : > { %799 = vmax.xlane.f32.xlu0 %v798_v24 }
 0x110   : > { %v781_v25 = vpop.f32.mrf.mxu2 }
 0x120   : > { %792 = vperm.xlu0 %1234, %v1524_v26  }
 0x17f   : > { %v800_v28 = vpop.xlane.xlu0 %799 }
 0x180   : > { %vm818_vm4 = vcmp.gt.f32.partialorder %v800_v28, %v817_v27  ;;  %v837_v30 = vmul.f32 35.0, %v800_v28  ;;  %vm801_vm7 = vcmp.eq.f32.partialorder %v798_v24, %v800_v28 }
 0x181   : > { %v824_v31 = vsel %vm818_vm4, %v800_v28, %v817_v27  ;;  %v802_v41 = vsel %vm801_vm7, %v788_v18, 1073741824 }
 0x182   : > { %825 = vst.msk [vmem:[#allocation5] sm:$0xff] %vm821_vm3, %v824_v31  ;;  %v838_v32 = vmax.f32 %v836_v29, %v837_v30  ;;  %v804_v42 = vshra.s32 %v802_v41, 16  ;;  %v803_v49 = vand.u32 65535, %v802_v41 }
 0x184   : > { %846 = vperm.xlu1 %1235, %v838_v32   ;;  %v840_v33 = vsub.f32 %v836_v29, %v838_v32  ;;  %856 = vst.msk [vmem:[#allocation2] sm:$0xff] %vm821_vm3, %v838_v32  ;;  %v806_v43 = vcvt.s32.f32 %v804_v42  ;;  %v805_v52 = vcvt.s32.f32 %v803_v49 }
 0x186   : > { %v841_v55 = vmul.f32 1.442695, %v840_v33 }
 0x192   : > { %v793_v34 = vpop.permute.xlu0 %792 }
 0x193   : > { %vm794_vm5 = vcmp.eq.s32.totalorder %v788_v18, %v793_v34 }
 0x194   : > { %vm797_vm6 = vmand %vm789_vm2, %vm794_vm5 }
 0x195   : > { %v826_v36 = vsel %vm797_vm6, 0.2, %v1302_v35 }
 0x196   : > { %v827_v37 = vsub.f32 %v783_v21, %v826_v36 }
 0x198   : > { %v828_v38 = vmul.f32 35.0, %v827_v37 }
 0x19a   : > { %v829_v39 = vsel %vm789_vm2, %v828_v38, -inf }
 0x19b   : > { %v831_v40 = vsel %vm797_vm6, %v829_v39, 0.0 }
 0x19c   : > { %832 = vadd.xlane.f32.xlu2 %v831_v40 }
 0x1ae   : > { %807 = vmin.xlane.f32.xlu1 %v806_v43 }
 0x1f6   : > { %v847_v47 = vpop.permute.xlu1 %846 }
 0x1f7   : > { %v849_v48 = vsub.f32 %v829_v39, %v847_v47 }
 0x1f9   : > { %v850_v50 = vmul.f32 1.442695, %v849_v48 }
 0x1fb   : > { %1236 = vpow2.f32 %v850_v50 }
 0x1fc   : > { %1238 = vpow2.f32 %v841_v55 }
 0x201   : > { %v1237_v54 = vpop.eup %1236 }
 0x202   : > { %v1239_v62 = vpop.eup %1238 }
 0x203   : > { %v843_v1 = vmul.f32 %v1239_v62, %v839_v63 }
 0x20f   : > { %v833_v45 = vpop.xlane.xlu2 %832 }
 0x210   : > { %v834_v46 = vadd.f32 %v833_v45, %v830_v44 }
 0x212   : > { %835 = vst.msk [vmem:[#allocation4] sm:$0xff] %vm821_vm3, %v834_v46 }
 0x221   : > { %v808_v51 = vpop.xlane.xlu1 %807 }
 0x222   : > { %vm809_vm8 = vcmp.eq.f32.partialorder %v806_v43, %v808_v51  ;;  %v814_v56 = vcvt.f32.s32 %v808_v51 }
 0x223   : > { %v810_v53 = vsel %vm809_vm8, %v805_v52, inf }
 0x224   : > { %811 = vmin.xlane.f32.xlu2 %v810_v53  ;;  %v815_v58 = vshll.u32 %v814_v56, 16 }
 0x22c   : > { %852 = vadd.xlane.f32.xlu2 %v1237_v54 }
 0x297   : > { %v812_v57 = vpop.xlane.xlu2 %811 }
 0x298   : > { %v813_v59 = vcvt.f32.s32 %v812_v57 }
 0x29a   : > { %v816_v61 = vadd.s32 %v815_v58, %v813_v59 }
 0x29c   : > { %v820_v0 = vsel %vm818_vm4, %v816_v61, %v819_v60 }
 0x29d   : > { %822 = vst.msk [vmem:[#allocation6] sm:$0xff] %vm821_vm3, %v820_v0 }
 0x29e   : > { %860 = sbr.rel (%p1142_p12) target bundleno = 696 (0x2b8), region = 81 }
 0x29f   : > { %v853_v2 = vpop.xlane.xlu2 %852 }
 0x2a0   : > { %v854_v3 = vadd.f32 %v853_v2, %v843_v1 }
 0x2a2   : > { %855 = vst.msk [vmem:[#allocation3] sm:$0xff] %vm821_vm3, %v854_v3 }
 0x2a3   : > { %v1303_v6 = vmov 0   ;;  %v861_v9 = vld [vmem:[#allocation2] sm:$0xff]  ;;  %v866_v11 = vld [vmem:[#allocation4] sm:$0xff] }
 0x2a4   : > { %v869_v5 = vld [vmem:[#allocation6] sm:$0xff] }
 0x2a5   : > { %vm870_vm9 = vcmp.eq.s32.totalorder %v869_v5, %v1524_v26 }
 0x2a6   : > { %v871_v7 = vsel %vm870_vm9, 1, %v1303_v6 }
 0x2a7   : > { %872 = vst.msk [vmem:[%s485_s18] sm:$0xff] %vm821_vm3, %v871_v7 }
 0x2a9   : > { %v862_v4 = vld [vmem:[#allocation3] sm:$0xff] }
 0x2aa   : > { %1240 = vlog2.f32 %v862_v4 }
 0x2b0   : > { %v1241_v8 = vpop.eup %1240 }
 0x2b1   : > { %v864_v10 = vmul.f32 0.6931472, %v1241_v8 }
 0x2b3   : > { %v865_v12 = vadd.f32 %v864_v10, %v861_v9 }
 0x2b5   : > { %v867_v13 = vsub.f32 %v865_v12, %v866_v11 }
 0x2b7   : > { %868 = vst.msk [vmem:[%s481_s29] sm:$0xff] %vm821_vm3, %v867_v13 }
 0x2b8 PF: > { %s15_s21 = sadd.s32 1, %s1296_s21   ;;  %s1576_s15 = smov %s1276_s16 }
 0x2b9   : > { %p12_p13 = scmp.ge.s32.totalorder %s15_s21, 8   ;;  %s1577_s16 = smov %s1378_s26 }
 0x2ba   : > { %s1578_s17 = smov %s1288_s19  ;;  %s1579_s18 = smov %s1292_s20 }
 0x2bb   : > { %s1580_s19 = smov %s1583_s22  ;;  %s1581_s20 = smov %s1587_s23 }
 0x2bc   :  { %14 = sbr.rel (!%p12_p13) target bundleno = 4 (0x4), region = 136 }

</bundles_post_ra>
